<compile_context>
chip_gen: v7x
topology: tpu7x:2x2x1
jax: 0.10.0
libtpu: 0.0.40
codegen_flags: <defaults>
</compile_context>

<pallas_src>
import functools

import jax
import jax.numpy as jnp
from jax.experimental import pallas as pl
from jax.experimental.pallas import tpu as pltpu


def _round_up(x, m):
    return (x + m - 1) // m * m


def _mdn_categorical_kernel(x_ref,
                            w1_ref, b1_ref,
                            w2_ref, b2_ref,
                            w3_ref, b3_ref,
                            w4_ref, b4_ref,
                            out_ref,
                            *, n_components):
    """One batch tile of the MLP + masked softmax. Weights stay resident in VMEM."""
    x = x_ref[...]

    # layers: Linear -> ReLU -> Linear -> ReLU -> Linear (f32 accumulation throughout)
    h = jnp.dot(x, w1_ref[...], preferred_element_type=jnp.float32) + b1_ref[...]
    h = jnp.maximum(h, 0.0)
    h = jnp.dot(h.astype(w2_ref.dtype), w2_ref[...],
                preferred_element_type=jnp.float32) + b2_ref[...]
    h = jnp.maximum(h, 0.0)
    h = jnp.dot(h.astype(w3_ref.dtype), w3_ref[...],
                preferred_element_type=jnp.float32) + b3_ref[...]

    # MixtureLogit: Linear (lane-padded to 128 out-features) -> masked Softmax(dim=1)
    logits = jnp.dot(h.astype(w4_ref.dtype), w4_ref[...],
                     preferred_element_type=jnp.float32) + b4_ref[...]

    col = jax.lax.broadcasted_iota(jnp.int32, logits.shape, 1)
    valid = col < n_components
    # Finite sentinel (no inf arithmetic); exp underflows to 0 for padded columns.
    logits = jnp.where(valid, logits, jnp.float32(-1e30))

    m = jnp.max(logits, axis=1, keepdims=True)
    e = jnp.exp(logits - m)
    e = jnp.where(valid, e, 0.0)               # belt & suspenders: padded lanes -> 0
    denom = jnp.sum(e, axis=1, keepdims=True)
    out_ref[...] = (e / denom).astype(out_ref.dtype)   # exact f32 divide


def categorical_network_forward(x, params, *, block_b=None,
                                compute_dtype=jnp.float32):
    """Returns probs of shape (B, n_components); sum over axis 1 == 1.

    block_b:       batch-tile rows per grid step (rounded up to a multiple of 8).
                   Default: 512 for large batches, else the (8-aligned) batch size.
    compute_dtype: dtype fed to the MXU (f32 or bf16). Bias/ReLU/softmax stay f32.
    """
    B, xdim = x.shape
    n_components = params["w4"].shape[1]
    n_pad = _round_up(max(n_components, 128), 128)   # lane-dense output width

    # --- batch tile / padding -------------------------------------------------
    if block_b is None:
        block_b = 512 if B >= 512 else _round_up(max(B, 8), 8)
    block_b = max(8, _round_up(block_b, 8))
    b_pad = _round_up(max(B, block_b), block_b)

    x_p = x if b_pad == B else jnp.pad(x, ((0, b_pad - B), (0, 0)))

    # --- pad final layer to 128 output lanes (zero columns, masked in-kernel) --
    w4, b4 = params["w4"], params["b4"]
    if n_pad != n_components:
        w4 = jnp.pad(w4, ((0, 0), (0, n_pad - n_components)))
        b4 = jnp.pad(b4, ((0, 0), (0, n_pad - n_components)))

    # --- dtype handling: MXU inputs in compute_dtype, biases stay f32 ----------
    cd = compute_dtype
    x_p = x_p.astype(cd)
    w1 = params["w1"].astype(cd)
    w2 = params["w2"].astype(cd)
    w3 = params["w3"].astype(cd)
    w4 = w4.astype(cd)
    b1 = params["b1"].astype(jnp.float32)
    b2 = params["b2"].astype(jnp.float32)
    b3 = params["b3"].astype(jnp.float32)
    b4 = b4.astype(jnp.float32)

    grid = (b_pad // block_b,)

    x_spec = pl.BlockSpec((block_b, xdim), lambda i: (i, 0))
    out_spec = pl.BlockSpec((block_b, n_pad), lambda i: (i, 0))

    def resident(arr):
        # Constant block index -> weights/biases fetched once, VMEM-resident
        # across all grid steps.
        return pl.BlockSpec(arr.shape, lambda i: (0, 0))

    kernel = functools.partial(_mdn_categorical_kernel, n_components=n_components)

    out = pl.pallas_call(
        kernel,
        out_shape=jax.ShapeDtypeStruct((b_pad, n_pad), jnp.float32),
        grid=grid,
        in_specs=[x_spec,
                  resident(w1), resident(b1),
                  resident(w2), resident(b2),
                  resident(w3), resident(b3),
                  resident(w4), resident(b4)],
        out_specs=out_spec,
        compiler_params=pltpu.CompilerParams(
            dimension_semantics=("parallel",)),   # megacore sharding on v7x
    )(x_p, w1, b1, w2, b2, w3, b3, w4, b4)

    return out[:B, :n_components]


def init_params(key, xdim, hdim=(64, 128, 64), n_components=5):
    """Deterministic, PyTorch-nn.Linear-style uniform init (kaiming-uniform-ish)."""
    dims = [xdim] + list(hdim) + [n_components]
    params = {}
    keys = jax.random.split(key, 2 * (len(dims) - 1))
    for i in range(len(dims) - 1):
        fan_in, fan_out = dims[i], dims[i + 1]
        bound = 1.0 / jnp.sqrt(float(fan_in))
        w = jax.random.uniform(keys[2 * i], (fan_in, fan_out),
                               minval=-bound, maxval=bound, dtype=jnp.float32)
        b = jax.random.uniform(keys[2 * i + 1], (1, fan_out),
                               minval=-bound, maxval=bound, dtype=jnp.float32)
        params[f"w{i + 1}"] = w
        params[f"b{i + 1}"] = b
    return params


def _ref_forward(x, params):
    """Pure-JAX reference (same semantics as the PyTorch module)."""
    h = jnp.maximum(x @ params["w1"] + params["b1"], 0.0)
    h = jnp.maximum(h @ params["w2"] + params["b2"], 0.0)
    h = h @ params["w3"] + params["b3"]
    logits = h @ params["w4"] + params["b4"]
    return jax.nn.softmax(logits, axis=1)


if __name__ == "__main__":
    key = jax.random.PRNGKey(0)
    k_param, k_x_small, k_x_big = jax.random.split(key, 3)

    xdim = 32
    n_components = 5
    params = init_params(k_param, xdim, hdim=(64, 128, 64), n_components=n_components)

    # TODO(synk): the PyTorch module returns a OneHotCategorical distribution; the
    # kernel returns its `probs` parameter (the distribution object itself has no
    # Pallas equivalent).

    # --- small batch: single grid step, f32 ------------------------------------
    x_small = jax.random.normal(k_x_small, (8, xdim), dtype=jnp.float32)
    probs = jax.block_until_ready(categorical_network_forward(x_small, params))
    ref = _ref_forward(x_small, params)
    assert probs.shape == (8, n_components)
    assert jnp.allclose(jnp.sum(probs, axis=1), jnp.ones(8), atol=1e-3)
    assert jnp.allclose(probs, ref, atol=1e-3)

    # --- larger ragged batch: multi-step grid + row padding, f32 ----------------
    x_big = jax.random.normal(k_x_big, (300, xdim), dtype=jnp.float32)
    probs_big = jax.block_until_ready(
        categorical_network_forward(x_big, params, block_b=128))
    ref_big = _ref_forward(x_big, params)
    assert probs_big.shape == (300, n_components)
    assert jnp.allclose(jnp.sum(probs_big, axis=1), jnp.ones(300), atol=1e-3)
    assert jnp.allclose(probs_big, ref_big, atol=1e-3)

    # --- bf16 matmul-input path (v6e/v7x recommendation), looser tolerance ------
    probs_bf16 = jax.block_until_ready(
        categorical_network_forward(x_big, params, block_b=128,
                                    compute_dtype=jnp.bfloat16))
    assert probs_bf16.shape == (300, n_components)
    assert jnp.allclose(jnp.sum(probs_bf16, axis=1), jnp.ones(300), atol=1e-2)
    assert jnp.allclose(probs_bf16, ref_big, atol=5e-2)

    print("KERNEL_OK")
</pallas_src>

<mosaic_0001>
module attributes {stable_mosaic.version = 11 : i64} {
  func.func @_mdn_categorical_kernel(%arg0: i32, %arg1: memref<8x32xf32, #tpu.memory_space<vmem>>, %arg2: memref<32x64xf32, #tpu.memory_space<vmem>>, %arg3: memref<1x64xf32, #tpu.memory_space<vmem>>, %arg4: memref<64x128xf32, #tpu.memory_space<vmem>>, %arg5: memref<1x128xf32, #tpu.memory_space<vmem>>, %arg6: memref<128x64xf32, #tpu.memory_space<vmem>>, %arg7: memref<1x64xf32, #tpu.memory_space<vmem>>, %arg8: memref<64x128xf32, #tpu.memory_space<vmem>>, %arg9: memref<1x128xf32, #tpu.memory_space<vmem>>, %arg10: memref<8x128xf32, #tpu.memory_space<vmem>>) attributes {dimension_semantics = [#tpu.dimension_semantics<parallel>], iteration_bounds = array<i64: 1>, scalar_prefetch = 0 : i64, scratch_operands = 0 : i64, tpu.core_type = #tpu.core_type<tc>, window_params = [{transform_indices = @transform_0, window_bounds = array<i64: 8, 32>}, {pipeline_mode = #tpu.pipeline_mode<synchronous>, transform_indices = @transform_1, window_bounds = array<i64: 32, 64>}, {pipeline_mode = #tpu.pipeline_mode<synchronous>, transform_indices = @transform_2, window_bounds = array<i64: 1, 64>}, {pipeline_mode = #tpu.pipeline_mode<synchronous>, transform_indices = @transform_3, window_bounds = array<i64: 64, 128>}, {pipeline_mode = #tpu.pipeline_mode<synchronous>, transform_indices = @transform_4, window_bounds = array<i64: 1, 128>}, {pipeline_mode = #tpu.pipeline_mode<synchronous>, transform_indices = @transform_5, window_bounds = array<i64: 128, 64>}, {pipeline_mode = #tpu.pipeline_mode<synchronous>, transform_indices = @transform_6, window_bounds = array<i64: 1, 64>}, {pipeline_mode = #tpu.pipeline_mode<synchronous>, transform_indices = @transform_7, window_bounds = array<i64: 64, 128>}, {pipeline_mode = #tpu.pipeline_mode<synchronous>, transform_indices = @transform_8, window_bounds = array<i64: 1, 128>}, {transform_indices = @transform_9, window_bounds = array<i64: 8, 128>}]} {
    %c0 = arith.constant 0 : index
    %c0_0 = arith.constant 0 : index
    %0 = vector.load %arg1[%c0, %c0_0] : memref<8x32xf32, #tpu.memory_space<vmem>>, vector<8x32xf32>
    %c0_1 = arith.constant 0 : index
    %c0_2 = arith.constant 0 : index
    %1 = vector.load %arg2[%c0_1, %c0_2] : memref<32x64xf32, #tpu.memory_space<vmem>>, vector<32x64xf32>
    %cst = arith.constant dense<0.000000e+00> : vector<8x64xf32>
    %2 = tpu.matmul %0, %1, %cst {dimension_numbers = #tpu.dot_dimension_numbers<[1], [0], [0], [1], [0, 0, 1, 1], [], []>} : vector<8x32xf32>, vector<32x64xf32>, vector<8x64xf32> -> vector<8x64xf32>
    %c0_3 = arith.constant 0 : index
    %c0_4 = arith.constant 0 : index
    %3 = vector.load %arg3[%c0_3, %c0_4] : memref<1x64xf32, #tpu.memory_space<vmem>>, vector<1x64xf32>
    %4 = vector.broadcast %3 : vector<1x64xf32> to vector<8x64xf32>
    %5 = arith.addf %2, %4 : vector<8x64xf32>
    %cst_5 = arith.constant 0.000000e+00 : f32
    %6 = vector.broadcast %cst_5 : f32 to vector<8x64xf32>
    %7 = arith.maximumf %5, %6 : vector<8x64xf32>
    %c0_6 = arith.constant 0 : index
    %c0_7 = arith.constant 0 : index
    %8 = vector.load %arg4[%c0_6, %c0_7] : memref<64x128xf32, #tpu.memory_space<vmem>>, vector<64x128xf32>
    %cst_8 = arith.constant dense<0.000000e+00> : vector<8x128xf32>
    %9 = tpu.matmul %7, %8, %cst_8 {dimension_numbers = #tpu.dot_dimension_numbers<[1], [0], [0], [1], [0, 0, 1, 1], [], []>} : vector<8x64xf32>, vector<64x128xf32>, vector<8x128xf32> -> vector<8x128xf32>
    %c0_9 = arith.constant 0 : index
    %c0_10 = arith.constant 0 : index
    %10 = vector.load %arg5[%c0_9, %c0_10] : memref<1x128xf32, #tpu.memory_space<vmem>>, vector<1x128xf32>
    %11 = vector.broadcast %10 : vector<1x128xf32> to vector<8x128xf32>
    %12 = arith.addf %9, %11 : vector<8x128xf32>
    %cst_11 = arith.constant 0.000000e+00 : f32
    %13 = vector.broadcast %cst_11 : f32 to vector<8x128xf32>
    %14 = arith.maximumf %12, %13 : vector<8x128xf32>
    %c0_12 = arith.constant 0 : index
    %c0_13 = arith.constant 0 : index
    %15 = vector.load %arg6[%c0_12, %c0_13] : memref<128x64xf32, #tpu.memory_space<vmem>>, vector<128x64xf32>
    %cst_14 = arith.constant dense<0.000000e+00> : vector<8x64xf32>
    %16 = tpu.matmul %14, %15, %cst_14 {dimension_numbers = #tpu.dot_dimension_numbers<[1], [0], [0], [1], [0, 0, 1, 1], [], []>} : vector<8x128xf32>, vector<128x64xf32>, vector<8x64xf32> -> vector<8x64xf32>
    %c0_15 = arith.constant 0 : index
    %c0_16 = arith.constant 0 : index
    %17 = vector.load %arg7[%c0_15, %c0_16] : memref<1x64xf32, #tpu.memory_space<vmem>>, vector<1x64xf32>
    %18 = vector.broadcast %17 : vector<1x64xf32> to vector<8x64xf32>
    %19 = arith.addf %16, %18 : vector<8x64xf32>
    %c0_17 = arith.constant 0 : index
    %c0_18 = arith.constant 0 : index
    %20 = vector.load %arg8[%c0_17, %c0_18] : memref<64x128xf32, #tpu.memory_space<vmem>>, vector<64x128xf32>
    %cst_19 = arith.constant dense<0.000000e+00> : vector<8x128xf32>
    %21 = tpu.matmul %19, %20, %cst_19 {dimension_numbers = #tpu.dot_dimension_numbers<[1], [0], [0], [1], [0, 0, 1, 1], [], []>} : vector<8x64xf32>, vector<64x128xf32>, vector<8x128xf32> -> vector<8x128xf32>
    %c0_20 = arith.constant 0 : index
    %c0_21 = arith.constant 0 : index
    %22 = vector.load %arg9[%c0_20, %c0_21] : memref<1x128xf32, #tpu.memory_space<vmem>>, vector<1x128xf32>
    %23 = vector.broadcast %22 : vector<1x128xf32> to vector<8x128xf32>
    %24 = arith.addf %21, %23 : vector<8x128xf32>
    %25 = tpu.iota {dimensions = array<i32: 1>} : vector<8x128xi32>
    %c5_i32 = arith.constant 5 : i32
    %26 = vector.broadcast %c5_i32 : i32 to vector<8x128xi32>
    %27 = arith.cmpi slt, %25, %26 : vector<8x128xi32>
    %cst_22 = arith.constant -1.000000e+30 : f32
    %28 = vector.broadcast %cst_22 : f32 to vector<8x128xf32>
    %29 = arith.select %27, %24, %28 : vector<8x128xi1>, vector<8x128xf32>
    %cst_23 = arith.constant dense<0xFF800000> : vector<8xf32>
    %30 = vector.multi_reduction <maximumf>, %29, %cst_23 [1] : vector<8x128xf32> to vector<8xf32>
    %31 = vector.shape_cast %30 : vector<8xf32> to vector<8x1xf32>
    %32 = vector.broadcast %31 : vector<8x1xf32> to vector<8x128xf32>
    %33 = arith.subf %29, %32 : vector<8x128xf32>
    %34 = math.exp %33 : vector<8x128xf32>
    %cst_24 = arith.constant 0.000000e+00 : f32
    %35 = vector.broadcast %cst_24 : f32 to vector<8x128xf32>
    %36 = arith.select %27, %34, %35 : vector<8x128xi1>, vector<8x128xf32>
    %cst_25 = arith.constant dense<0.000000e+00> : vector<8xf32>
    %37 = vector.multi_reduction <add>, %36, %cst_25 [1] : vector<8x128xf32> to vector<8xf32>
    %38 = vector.shape_cast %37 : vector<8xf32> to vector<8x1xf32>
    %39 = vector.broadcast %38 : vector<8x1xf32> to vector<8x128xf32>
    %40 = arith.divf %36, %39 : vector<8x128xf32>
    %c0_26 = arith.constant 0 : index
    %c0_27 = arith.constant 0 : index
    %41 = vector.load %arg10[%c0_26, %c0_27] : memref<8x128xf32, #tpu.memory_space<vmem>>, vector<8x128xf32>
    tpu.vector_store %arg10[%c0_26, %c0_27], %40 {strides = array<i32>} : memref<8x128xf32, #tpu.memory_space<vmem>>, vector<8x128xf32>,
    return
  }
  func.func @transform_0(%arg0: i32) -> (i32, i32) {
    %c0_i32 = arith.constant 0 : i32
    %c0_i32_0 = arith.constant 0 : i32
    return %arg0, %c0_i32 : i32, i32
  }
  func.func @transform_1(%arg0: i32) -> (i32, i32) {
    %c0_i32 = arith.constant 0 : i32
    %c0_i32_0 = arith.constant 0 : i32
    %c0_i32_1 = arith.constant 0 : i32
    return %c0_i32, %c0_i32_0 : i32, i32
  }
  func.func @transform_2(%arg0: i32) -> (i32, i32) {
    %c0_i32 = arith.constant 0 : i32
    %c0_i32_0 = arith.constant 0 : i32
    %c0_i32_1 = arith.constant 0 : i32
    return %c0_i32, %c0_i32_0 : i32, i32
  }
  func.func @transform_3(%arg0: i32) -> (i32, i32) {
    %c0_i32 = arith.constant 0 : i32
    %c0_i32_0 = arith.constant 0 : i32
    %c0_i32_1 = arith.constant 0 : i32
    return %c0_i32, %c0_i32_0 : i32, i32
  }
  func.func @transform_4(%arg0: i32) -> (i32, i32) {
    %c0_i32 = arith.constant 0 : i32
    %c0_i32_0 = arith.constant 0 : i32
    %c0_i32_1 = arith.constant 0 : i32
    return %c0_i32, %c0_i32_0 : i32, i32
  }
  func.func @transform_5(%arg0: i32) -> (i32, i32) {
    %c0_i32 = arith.constant 0 : i32
    %c0_i32_0 = arith.constant 0 : i32
    %c0_i32_1 = arith.constant 0 : i32
    return %c0_i32, %c0_i32_0 : i32, i32
  }
  func.func @transform_6(%arg0: i32) -> (i32, i32) {
    %c0_i32 = arith.constant 0 : i32
    %c0_i32_0 = arith.constant 0 : i32
    %c0_i32_1 = arith.constant 0 : i32
    return %c0_i32, %c0_i32_0 : i32, i32
  }
  func.func @transform_7(%arg0: i32) -> (i32, i32) {
    %c0_i32 = arith.constant 0 : i32
    %c0_i32_0 = arith.constant 0 : i32
    %c0_i32_1 = arith.constant 0 : i32
    return %c0_i32, %c0_i32_0 : i32, i32
  }
  func.func @transform_8(%arg0: i32) -> (i32, i32) {
    %c0_i32 = arith.constant 0 : i32
    %c0_i32_0 = arith.constant 0 : i32
    %c0_i32_1 = arith.constant 0 : i32
    return %c0_i32, %c0_i32_0 : i32, i32
  }
  func.func @transform_9(%arg0: i32) -> (i32, i32) {
    %c0_i32 = arith.constant 0 : i32
    %c0_i32_0 = arith.constant 0 : i32
    return %arg0, %c0_i32 : i32, i32
  }
}

</mosaic_0001>

<bundles_post_ra>
// kernel: tpu_custom_call.1
= control target key start
LH: loop header
LB: loop body
LE: loop exit
PB: predicated region body
PF: predicated region fallthrough
CT: control target
= control target key end

     0   :  { %v637_v3 = vmov 0.0|0.0   ;;  %vm638_vm0 = vmmov 0   ;;  %v639_v6 = vmov 0.0   ;;  %s854_s0 = inlined_call_operand.vmem [shape: f32[8,32], index: 0, kind: input, shape index: {}]   ;;  %s855_s1 = inlined_call_operand.vmem [shape: f32[32,64], index: 1, kind: input, shape index: {}]   ;;  %s856_s2 = inlined_call_operand.vmem [shape: f32[1,64], index: 2, kind: input, shape index: {}]   ;;  %s857_s3 = inlined_call_operand.vmem [shape: f32[64,128], index: 3, kind: input, shape index: {}]   ;;  %s858_s4 = inlined_call_operand.vmem [shape: f32[1,128], index: 4, kind: input, shape index: {}]   ;;  %s859_s5 = inlined_call_operand.vmem [shape: f32[128,64], index: 5, kind: input, shape index: {}]   ;;  %s860_s6 = inlined_call_operand.vmem [shape: f32[1,64], index: 6, kind: input, shape index: {}]   ;;  %s861_s7 = inlined_call_operand.vmem [shape: f32[64,128], index: 7, kind: input, shape index: {}]   ;;  %s862_s8 = inlined_call_operand.vmem [shape: f32[1,128], index: 8, kind: input, shape index: {}]   ;;  %s863_s9 = inlined_call_operand.hbm [shape: f32[8,128], index: 9, kind: output, shape index: {}]  }
   0x1   :  { %v34_v0 = vld [vmem:[%s855_s1] sm:$0xff]  ;;  %v35_v1 = vld [vmem:[%s855_s1 + $0x8] sm:$0xff]  ;;  %v36_v2 = vld [vmem:[%s855_s1 + $0x10] sm:$0xff]  ;;  %551 = vmatprep.subr.bf16.mxu0 %v637_v3  ;;  %475 = vmatprep.mubr.msk.f32.mxu0 %vm638_vm0, %v639_v6 }
   0x2   :  { %v552_v4 = vpack.c.bf16 %v35_v1, %v34_v0  ;;  %v37_v5 = vld [vmem:[%s855_s1 + $0x18] sm:$0xff]  ;;  %v120_v7 = vld [vmem:[%s857_s3] sm:$0xff]  ;;  %557 = vmatprep.subr.bf16.mxu1 %v637_v3  ;;  %v121_v8 = vld [vmem:[%s857_s3 + $0x8] sm:$0xff]  ;;  %494 = vmatprep.mubr.msk.f32.mxu1 %vm638_vm0, %v639_v6 }
   0x3   :  { %v122_v9 = vld [vmem:[%s857_s3 + $0x10] sm:$0xff]  ;;  %v123_v10 = vld [vmem:[%s857_s3 + $0x18] sm:$0xff]  ;;  %v555_v11 = vpack.c.bf16 %v37_v5, %v36_v2  ;;  %v558_v12 = vpack.c.bf16 %v121_v8, %v120_v7 }
   0x4   :  { %553 = vmatpush3.bf16.msra.mxu0 %v552_v4 }
   0x5   :  { %554 = vmatprep.subr.bf16.mxu0 %v637_v3 }
   0x6   :  { %14 = vsyncpa [#allocation3], 0  ;;  %559 = vmatpush3.bf16.msra.mxu1 %v558_v12  ;;  %v561_v13 = vpack.c.bf16 %v123_v10, %v122_v9  ;;  %v124_v14 = vld [vmem:[%s857_s3 + $0x20] sm:$0xff]  ;;  %v125_v15 = vld [vmem:[%s857_s3 + $0x28] sm:$0xff]  ;;  %vm45_vm1 = vcmask 261120   ;;  %vm135_vm2 = vcmask 523264   ;;  %v391_v7 = vlaneseq }
   0x7   :  { %560 = vmatprep.subr.bf16.mxu1 %v637_v3  ;;  %v33_v16 = vld [vmem:[%s854_s0] sm:$0xff]  ;;  %v564_v17 = vpack.c.bf16 %v125_v15, %v124_v14  ;;  %v126_v18 = vld [vmem:[%s857_s3 + $0x30] sm:$0xff]  ;;  %v127_v19 = vld [vmem:[%s857_s3 + $0x38] sm:$0xff] }
   0x8   :  { %556 = vmatpush3.bf16.msra.mxu0 %v555_v11  ;;  %v567_v20 = vpack.c.bf16 %v127_v19, %v126_v18  ;;  %v210_v21 = vld [vmem:[%s859_s5] sm:$0xff]  ;;  %v211_v22 = vld [vmem:[%s859_s5 + $0x8] sm:$0xff]  ;;  %v212_v23 = vld [vmem:[%s859_s5 + $0x10] sm:$0xff]  ;;  %v392_v8 = vand.u32 127, %v391_v7 }
   0x9   :  { %569 = vmatprep.subr.bf16.mxu0 %v637_v3  ;;  %v570_v24 = vpack.c.bf16 %v211_v22, %v210_v21  ;;  %v213_v25 = vld [vmem:[%s859_s5 + $0x18] sm:$0xff]  ;;  %v214_v27 = vld [vmem:[%s859_s5 + $0x20] sm:$0xff]  ;;  %v215_v28 = vld [vmem:[%s859_s5 + $0x28] sm:$0xff] }
   0xa   :  { %562 = vmatpush3.bf16.msra.mxu1 %v561_v13  ;;  %v573_v26 = vpack.c.bf16 %v213_v25, %v212_v23  ;;  %v576_v29 = vpack.c.bf16 %v215_v28, %v214_v27  ;;  %v216_v30 = vld [vmem:[%s859_s5 + $0x30] sm:$0xff]  ;;  %v217_v31 = vld [vmem:[%s859_s5 + $0x38] sm:$0xff]  ;;  %v218_v33 = vld [vmem:[%s859_s5 + $0x40] sm:$0xff]  ;;  %vm393_vm3 = vcmp.lt.s32.totalorder %v392_v8, 5 }
   0xb   :  { %476 = vmatmul.mubr.msk.f32.vlgmr.msra.gmra.mrb[0].mxu0 %vm45_vm1, %v33_v16  ;;  %563 = vmatprep.subr.bf16.mxu1 %v637_v3  ;;  %v579_v32 = vpack.c.bf16 %v217_v31, %v216_v30  ;;  %v219_v34 = vld [vmem:[%s859_s5 + $0x48] sm:$0xff]  ;;  %v220_v36 = vld [vmem:[%s859_s5 + $0x50] sm:$0xff]  ;;  %v221_v37 = vld [vmem:[%s859_s5 + $0x58] sm:$0xff] }
   0xc   :  { %529 = vmatprep.mubr.msk.f32.mxu0 %vm638_vm0, %v639_v6  ;;  %571 = vmatpush3.bf16.msra.mxu0 %v570_v24  ;;  %v582_v35 = vpack.c.bf16 %v219_v34, %v218_v33  ;;  %v585_v38 = vpack.c.bf16 %v221_v37, %v220_v36  ;;  %v222_v39 = vld [vmem:[%s859_s5 + $0x60] sm:$0xff]  ;;  %v223_v40 = vld [vmem:[%s859_s5 + $0x68] sm:$0xff]  ;;  %v224_v47 = vld [vmem:[%s859_s5 + $0x70] sm:$0xff] }
   0xd   :  { %572 = vmatprep.subr.bf16.mxu0 %v637_v3  ;;  %v588_v41 = vpack.c.bf16 %v223_v40, %v222_v39  ;;  %v420_v42 = vld [vmem:[%s856_s2] ss:$0 sm:$0xff]  ;;  %v225_v48 = vld [vmem:[%s859_s5 + $0x78] sm:$0xff]  ;;  %v304_v51 = vld [vmem:[%s861_s7 + $0x8] sm:$0xff] }
   0xe   :  { %565 = vmatpush3.bf16.msra.mxu1 %v564_v17  ;;  %v591_v49 = vpack.c.bf16 %v225_v48, %v224_v47  ;;  %v303_v50 = vld [vmem:[%s861_s7] sm:$0xff]  ;;  %v305_v52 = vld [vmem:[%s861_s7 + $0x10] sm:$0xff]  ;;  %v306_v54 = vld [vmem:[%s861_s7 + $0x18] sm:$0xff] }
   0xf   :  { %566 = vmatprep.subr.bf16.mxu1 %v637_v3  ;;  %v594_v53 = vpack.c.bf16 %v304_v51, %v303_v50  ;;  %v597_v55 = vpack.c.bf16 %v306_v54, %v305_v52  ;;  %v307_v56 = vld [vmem:[%s861_s7 + $0x20] sm:$0xff]  ;;  %v308_v57 = vld [vmem:[%s861_s7 + $0x28] sm:$0xff]  ;;  %v309_v0 = vld [vmem:[%s861_s7 + $0x30] sm:$0xff] }
  0x10   :  { %574 = vmatpush3.bf16.msra.mxu0 %v573_v26  ;;  %v600_v58 = vpack.c.bf16 %v308_v57, %v307_v56  ;;  %v422_v59 = vld [vmem:[%s858_s4] ss:$0 sm:$0xff]  ;;  %v310_v1 = vld [vmem:[%s861_s7 + $0x38] sm:$0xff] }
  0x11   :  { %575 = vmatprep.subr.bf16.mxu0 %v637_v3  ;;  %v603_v2 = vpack.c.bf16 %v310_v1, %v309_v0  ;;  %v425_v9 = vld [vmem:[%s862_s8] ss:$0 sm:$0xff] }
  0x12   :  { %568 = vmatpush3.bf16.msra.mxu1 %v567_v20 }
  0x13   :  { %593 = vmatprep.subr.bf16.mxu1 %v637_v3 }
  0x14   :  { %577 = vmatpush3.bf16.msra.mxu0 %v576_v29 }
  0x15   :  { %578 = vmatprep.subr.bf16.mxu0 %v637_v3 }
  0x18   :  { %580 = vmatpush3.bf16.msra.mxu0 %v579_v32 }
  0x19   :  { %581 = vmatprep.subr.bf16.mxu0 %v637_v3 }
  0x1c   :  { %583 = vmatpush3.bf16.msra.mxu0 %v582_v35 }
  0x1d   :  { %584 = vmatprep.subr.bf16.mxu0 %v637_v3 }
  0x20   :  { %586 = vmatpush3.bf16.msra.mxu0 %v585_v38 }
  0x21   :  { %587 = vmatprep.subr.bf16.mxu0 %v637_v3 }
  0x24   :  { %589 = vmatpush3.bf16.msra.mxu0 %v588_v41 }
  0x25   :  { %590 = vmatprep.subr.bf16.mxu0 %v637_v3 }
  0x28   :  { %592 = vmatpush3.bf16.msra.mxu0 %v591_v49 }
  0xde   :  { %v115_v43 = vpop.f32.mrb[0].mxu0 }
  0xdf   :  { %v116_v44 = vadd.f32 %v420_v42, %v115_v43  ;;  %v477_v45 = vpop.f32.mrb[1].mxu0 }
  0xe1   :  { %v119_v46 = vmax.f32 %v116_v44, 0.0 }
  0xe3   :  { %495 = vmatmul.mubr.msk.f32.vlgmr.msra.gmra.mrb[0].mxu1 %vm135_vm2, %v119_v46 }
  0xe4   :  { %548 = vmatprep.mubr.msk.f32.mxu1 %vm638_vm0, %v639_v6  ;;  %595 = vmatpush3.bf16.msra.mxu1 %v594_v53 }
  0xe5   :  { %596 = vmatprep.subr.bf16.mxu1 %v637_v3 }
  0xe8   :  { %598 = vmatpush3.bf16.msra.mxu1 %v597_v55 }
  0xe9   :  { %599 = vmatprep.subr.bf16.mxu1 %v637_v3 }
  0xec   :  { %601 = vmatpush3.bf16.msra.mxu1 %v600_v58 }
  0xed   :  { %602 = vmatprep.subr.bf16.mxu1 %v637_v3  ;;  %v424_v3 = vld [vmem:[%s860_s6] ss:$0 sm:$0xff]  ;;  %s640_s6 = smov [#allocation2]  }
  0xee   :  { %s412_s7 = sshll.u32 %s640_s6, 4  ;;  %s413_s7 = int_to_ptr.vmem [resolvable:$true] %s412_s7 }
  0xef   :  { %s613_s8 = scalar_lea.vmem %s413_s7, 128  ;;  %p618_p1 = scmp.lt.s32.totalorder %s413_s7, %s413_s7 }
  0xf0   :  { %604 = vmatpush3.bf16.msra.mxu1 %v603_v2  ;;  %p614_p0 = scmp.ne.s32.totalorder %s413_s7, %s613_s8  ;;  %p619_p2 = scmp.lt.s32.totalorder %s613_s8, %s613_s8 }
  0xf2   :  { %p620_p3 = por %p619_p2, %p618_p1 }
  0xf4   :  { %p621_p4 = pnand %p620_p3, %p614_p0 }
 0x1b6   :  { %v205_v60 = vpop.f32.mrb[0].mxu1 }
 0x1b7   :  { %v206_v61 = vadd.f32 %v422_v59, %v205_v60  ;;  %v496_v62 = vpop.f32.mrb[1].mxu1 }
 0x1b9   :  { %v209_v63 = vmax.f32 %v206_v61, 0.0 }
 0x1bb   :  { %530 = vmatmul.mubr.f32.vlgmr.msra.gmra.mrb[2].mxu0 %v209_v63 }
 0x28e   :  { %v299_v4 = vpop.f32.mrb[2].mxu0 }
 0x28f   :  { %v300_v5 = vadd.f32 %v424_v3, %v299_v4  ;;  %v531_v6 = vpop.f32.mrb[3].mxu0 }
 0x291   :  { %549 = vmatmul.mubr.msk.f32.vlgmr.msra.gmra.mrb[2].mxu1 %vm135_vm2, %v300_v5 }
 0x364   :  { %v387_v10 = vpop.f32.mrb[2].mxu1 }
 0x365   :  { %v388_v11 = vadd.f32 %v425_v9, %v387_v10  ;;  %v550_v12 = vpop.f32.mrb[3].mxu1 }
 0x367   :  { %v394_v13 = vsel %vm393_vm3, %v388_v11, -1e+30 }
 0x368   :  { %395 = vmax.xlane.f32.xlu0 %v394_v13 }
 0x3f5   :  { %v396_v14 = vpop.xlane.xlu0 %395 }
 0x3f6   :  { %v397_v15 = vsub.f32 %v394_v13, %v396_v14 }
 0x3f8   :  { %v398_v16 = vmul.f32 1.442695, %v397_v15 }
 0x3fa   :  { %609 = vpow2.f32 %v398_v16 }
 0x404   :  { %v610_v17 = vpop.eup %609 }
 0x405   :  { %v400_v18 = vsel %vm393_vm3, %v610_v17, 0.0 }
 0x406   :  { %401 = vadd.xlane.f32.xlu0 %v400_v18 }
 0x493   :  { %v402_v19 = vpop.xlane.xlu0 %401 }
 0x494   :  { %611 = vrcp.f32 %v402_v19 }
 0x49e   :  { %v612_v20 = vpop.eup %611 }
 0x49f   :  { %v404_v21 = vmul.f32 %v612_v20, %v400_v18 }
 0x4a1   :  { %405 = vst [vmem:[#allocation2] sm:$0xff] %v404_v21 }
 0x4a2   :  { %624 = shalt.err (!%p621_p4)
}
 0x4a3   :  { %s625_s19 = scalar_lea.hbm %s863_s9, 128 }
 0x4a4   :  { %p626_p5 = scmp.ne.s32.totalorder %s863_s9, %s625_s19  ;;  %p629_p6 = scmp.lt.u32.totalorder %s625_s19, %s863_s9 }
 0x4a6   :  { %p631_p7 = pnand %p629_p6, %p626_p5 }
 0x4a8   :  { %634 = shalt.err (!%p631_p7)
}
 0x4a9   :  { %415 = dma.vmem_to_hbm [thread:$0]  %s413_s7, 128, %s863_s9, [#allocation3]  }
 0x4aa   :  { %635 = dma.done.wait [#allocation3], 128  }
 0x4ab   :  { %636 = vsyncadd [#allocation3], 4294967168 }
 0x4ac   :  { %419 = vsyncpa [#allocation3], 1 }

</bundles_post_ra>
